<compile_context>
chip_gen: v6e
topology: v6e:2x2x1
jax: 0.10.0
libtpu: 0.0.40
codegen_flags: <defaults>
</compile_context>

<pallas_src>
import jax
import jax.numpy as jnp
from jax import lax
from jax.experimental import pallas as pl
from jax.experimental.pallas import tpu as pltpu

LANE = 128                    # lane width: last dim of every tile
MAX_TR = 4096                 # streaming tile height -> 2 MiB f32 blocks
SINGLE_TILE_MAX_ROWS = 16384  # <= 8 MiB f32: keep whole array as one tile

# Buffer from __init__ (unused by forward(), kept only for parity).
LAPLACIAN_KERNEL = jnp.array(
    [[-1.0, -1.0, -1.0], [-1.0, 8.0, -1.0], [-1.0, -1.0, -1.0]],
    dtype=jnp.float32).reshape(1, 1, 3, 3)


def _make_td_kernel(tr, n_valid, has_pad):
    """Fused kernel over grid (phase, tile)."""
    n_f = float(n_valid)

    def kernel(x_ref, out_ref, min_acc, max_acc, sum_acc, stats):
        p = pl.program_id(0)
        i = pl.program_id(1)
        nt = pl.num_programs(1)

        @pl.when(jnp.logical_and(p == 0, i == 0))
        def _init():
            min_acc[...] = jnp.full_like(min_acc, jnp.inf)
            max_acc[...] = jnp.full_like(max_acc, -jnp.inf)
            sum_acc[...] = jnp.zeros_like(sum_acc)

        x = x_ref[...].astype(jnp.float32)      # cast in-register (bf16-friendly)

        if has_pad:   # static: mask tail padding (only present in the last tile)
            row = lax.broadcasted_iota(jnp.int32, (tr, LANE), 0) + i * tr
            lane = lax.broadcasted_iota(jnp.int32, (tr, LANE), 1)
            valid = (row * LANE + lane) < n_valid
        else:
            valid = None

        @pl.when(p == 0)
        def _minmax():
            xm = x if valid is None else jnp.where(valid, x, jnp.inf)
            xM = x if valid is None else jnp.where(valid, x, -jnp.inf)
            min_acc[...] = jnp.minimum(
                min_acc[...], jnp.min(xm.reshape(-1, 8, LANE), axis=0))
            max_acc[...] = jnp.maximum(
                max_acc[...], jnp.max(xM.reshape(-1, 8, LANE), axis=0))

        @pl.when(jnp.logical_and(p == 0, i == nt - 1))
        def _stats():
            # One cross-lane/sublane reduce and one exact divide, total.
            mn = jnp.min(min_acc[...])
            mx = jnp.max(max_acc[...])
            stats[0] = mn
            stats[1] = 1.0 / (mx - mn + 1e-10)

        @pl.when(p == 1)
        def _entropy():
            mn = stats[0]                        # scalar (SMEM) broadcast
            inv = stats[1]
            c = (x - mn) * inv                   # pure VPU work per element
            term = c * jnp.log2(jnp.maximum(c, 1e-6))
            if valid is not None:
                term = jnp.where(valid, term, 0.0)
            sum_acc[...] += jnp.sum(term.reshape(-1, 8, LANE), axis=0)

        @pl.when(jnp.logical_and(p == 1, i == nt - 1))
        def _finalize():
            out_ref[...] = jnp.reshape(jnp.sum(sum_acc[...]) / n_f, (1, 1))

    return kernel


def td_forward(x):
    """Pallas implementation of TD.forward."""
    n = int(x.size)
    flat = x.reshape(-1)                         # keep native dtype in HBM

    rows_min = (n + LANE - 1) // LANE
    rows8 = ((rows_min + 7) // 8) * 8
    if rows8 <= SINGLE_TILE_MAX_ROWS:
        tr = rows8                               # whole array = one resident tile
    else:
        tr = MAX_TR                              # stream 2 MiB tiles
    rows = ((rows8 + tr - 1) // tr) * tr
    pad = rows * LANE - n
    if pad:
        flat = jnp.pad(flat, (0, pad))
    x2 = flat.reshape(rows, LANE)
    n_tiles = rows // tr

    kernel = _make_td_kernel(tr, n, pad > 0)

    out = pl.pallas_call(
        kernel,
        out_shape=jax.ShapeDtypeStruct((1, 1), jnp.float32),
        grid_spec=pltpu.PrefetchScalarGridSpec(
            num_scalar_prefetch=0,
            grid=(2, n_tiles),                   # (phase, tile); tile is fastest
            in_specs=[pl.BlockSpec((tr, LANE), lambda p, i: (i, 0))],
            out_specs=pl.BlockSpec((1, 1), lambda p, i: (0, 0)),
            scratch_shapes=[pltpu.VMEM((8, LANE), jnp.float32),   # min accum
                            pltpu.VMEM((8, LANE), jnp.float32),   # max accum
                            pltpu.VMEM((8, LANE), jnp.float32),   # sum accum
                            pltpu.SMEM((2,), jnp.float32)]),      # [min, 1/range]
        compiler_params=pltpu.CompilerParams(
            dimension_semantics=("arbitrary", "arbitrary"),
            vmem_limit_bytes=32 * 1024 * 1024),
    )(x2)
    return out[0, 0]


def td_forward_ref(x):
    """Pure-JAX reference mirroring the PyTorch forward."""
    x = x.astype(jnp.float32)
    mx = jnp.max(x)
    mn = jnp.min(x)
    c = (x - mn) / (mx - mn + 1e-10)
    return jnp.mean(c * jnp.log2(jnp.maximum(c, 1e-6)))


if __name__ == "__main__":
    key = jax.random.PRNGKey(0)
    # image1: NCHW, same convention as the PyTorch module
    x = jax.random.normal(key, (2, 4, 16, 16), dtype=jnp.float32)

    loss = jax.block_until_ready(jax.jit(td_forward)(x))
    ref = td_forward_ref(x)
    assert jnp.allclose(loss, ref, rtol=1e-5, atol=1e-6), (loss, ref)

    # Exercise the padded / masked path (shape not a multiple of 8*128).
    x_odd = jax.random.normal(jax.random.PRNGKey(1), (2, 3, 15, 17),
                              dtype=jnp.float32)
    loss_odd = jax.block_until_ready(jax.jit(td_forward)(x_odd))
    ref_odd = td_forward_ref(x_odd)
    assert jnp.allclose(loss_odd, ref_odd, rtol=1e-5, atol=1e-6), (loss_odd, ref_odd)

    # TODO(synk): fusion_TD uses kornia SSIMLoss and LaplaceAlogrithm uses F.conv2d;
    # neither is reachable from forward(), so they are not implemented here.
    print("KERNEL_OK")
</pallas_src>

<mosaic_0001>
module attributes {stable_mosaic.version = 11 : i64} {
  func.func @kernel(%arg0: i32, %arg1: i32, %arg2: memref<16x128xf32, #tpu.memory_space<vmem>>, %arg3: memref<1x1xf32, #tpu.memory_space<vmem>>, %arg4: memref<8x128xf32, #tpu.memory_space<vmem>>, %arg5: memref<8x128xf32, #tpu.memory_space<vmem>>, %arg6: memref<8x128xf32, #tpu.memory_space<vmem>>, %arg7: memref<2xf32, #tpu.memory_space<smem>>) attributes {dimension_semantics = [#tpu.dimension_semantics<arbitrary>, #tpu.dimension_semantics<arbitrary>], iteration_bounds = array<i64: 2, 1>, scalar_prefetch = 0 : i64, scratch_operands = 4 : i64, tpu.core_type = #tpu.core_type<tc>, window_params = [{transform_indices = @transform_0, window_bounds = array<i64: 16, 128>}, {pipeline_mode = #tpu.pipeline_mode<synchronous>, transform_indices = @transform_1, window_bounds = array<i64: 1, 1>}]} {
    %c0_i32 = arith.constant 0 : i32
    %0 = arith.cmpi eq, %arg0, %c0_i32 : i32
    %c0_i32_0 = arith.constant 0 : i32
    %1 = arith.cmpi eq, %arg1, %c0_i32_0 : i32
    %2 = arith.andi %0, %1 : i1
    %3 = arith.extui %2 : i1 to i32
    %c0_i32_1 = arith.constant 0 : i32
    %4 = arith.cmpi ne, %3, %c0_i32_1 : i32
    scf.if %4 {
      %cst = arith.constant 0x7F800000 : f32
      %22 = vector.broadcast %cst : f32 to vector<8x128xf32>
      %c0_12 = arith.constant 0 : index
      %c0_13 = arith.constant 0 : index
      %23 = vector.load %arg4[%c0_12, %c0_13] : memref<8x128xf32, #tpu.memory_space<vmem>>, vector<8x128xf32>
      tpu.vector_store %arg4[%c0_12, %c0_13], %22 {strides = array<i32>} : memref<8x128xf32, #tpu.memory_space<vmem>>, vector<8x128xf32>,
      %cst_14 = arith.constant 0xFF800000 : f32
      %24 = vector.broadcast %cst_14 : f32 to vector<8x128xf32>
      %c0_15 = arith.constant 0 : index
      %c0_16 = arith.constant 0 : index
      %25 = vector.load %arg5[%c0_15, %c0_16] : memref<8x128xf32, #tpu.memory_space<vmem>>, vector<8x128xf32>
      tpu.vector_store %arg5[%c0_15, %c0_16], %24 {strides = array<i32>} : memref<8x128xf32, #tpu.memory_space<vmem>>, vector<8x128xf32>,
      %cst_17 = arith.constant 0.000000e+00 : f32
      %26 = vector.broadcast %cst_17 : f32 to vector<8x128xf32>
      %c0_18 = arith.constant 0 : index
      %c0_19 = arith.constant 0 : index
      %27 = vector.load %arg6[%c0_18, %c0_19] : memref<8x128xf32, #tpu.memory_space<vmem>>, vector<8x128xf32>
      tpu.vector_store %arg6[%c0_18, %c0_19], %26 {strides = array<i32>} : memref<8x128xf32, #tpu.memory_space<vmem>>, vector<8x128xf32>,
    } else {
    }
    %c0 = arith.constant 0 : index
    %c0_2 = arith.constant 0 : index
    %5 = vector.load %arg2[%c0, %c0_2] : memref<16x128xf32, #tpu.memory_space<vmem>>, vector<16x128xf32>
    %c0_i32_3 = arith.constant 0 : i32
    %6 = arith.cmpi eq, %arg0, %c0_i32_3 : i32
    %7 = arith.extui %6 : i1 to i32
    %c0_i32_4 = arith.constant 0 : i32
    %8 = arith.cmpi ne, %7, %c0_i32_4 : i32
    scf.if %8 {
      %c0_12 = arith.constant 0 : index
      %c0_13 = arith.constant 0 : index
      %22 = vector.load %arg4[%c0_12, %c0_13] : memref<8x128xf32, #tpu.memory_space<vmem>>, vector<8x128xf32>
      %23 = vector.shape_cast %5 : vector<16x128xf32> to vector<2x8x128xf32>
      %cst = arith.constant dense<0x7F800000> : vector<8x128xf32>
      %24 = vector.multi_reduction <minimumf>, %23, %cst [0] : vector<2x8x128xf32> to vector<8x128xf32>
      %25 = arith.minimumf %22, %24 : vector<8x128xf32>
      %c0_14 = arith.constant 0 : index
      %c0_15 = arith.constant 0 : index
      %26 = vector.load %arg4[%c0_14, %c0_15] : memref<8x128xf32, #tpu.memory_space<vmem>>, vector<8x128xf32>
      tpu.vector_store %arg4[%c0_14, %c0_15], %25 {strides = array<i32>} : memref<8x128xf32, #tpu.memory_space<vmem>>, vector<8x128xf32>,
      %c0_16 = arith.constant 0 : index
      %c0_17 = arith.constant 0 : index
      %27 = vector.load %arg5[%c0_16, %c0_17] : memref<8x128xf32, #tpu.memory_space<vmem>>, vector<8x128xf32>
      %28 = vector.shape_cast %5 : vector<16x128xf32> to vector<2x8x128xf32>
      %cst_18 = arith.constant dense<0xFF800000> : vector<8x128xf32>
      %29 = vector.multi_reduction <maximumf>, %28, %cst_18 [0] : vector<2x8x128xf32> to vector<8x128xf32>
      %30 = arith.maximumf %27, %29 : vector<8x128xf32>
      %c0_19 = arith.constant 0 : index
      %c0_20 = arith.constant 0 : index
      %31 = vector.load %arg5[%c0_19, %c0_20] : memref<8x128xf32, #tpu.memory_space<vmem>>, vector<8x128xf32>
      tpu.vector_store %arg5[%c0_19, %c0_20], %30 {strides = array<i32>} : memref<8x128xf32, #tpu.memory_space<vmem>>, vector<8x128xf32>,
    } else {
    }
    %c0_i32_5 = arith.constant 0 : i32
    %9 = arith.cmpi eq, %arg0, %c0_i32_5 : i32
    %c0_i32_6 = arith.constant 0 : i32
    %10 = arith.cmpi eq, %arg1, %c0_i32_6 : i32
    %11 = arith.andi %9, %10 : i1
    %12 = arith.extui %11 : i1 to i32
    %c0_i32_7 = arith.constant 0 : i32
    %13 = arith.cmpi ne, %12, %c0_i32_7 : i32
    scf.if %13 {
      %c0_12 = arith.constant 0 : index
      %c0_13 = arith.constant 0 : index
      %22 = vector.load %arg4[%c0_12, %c0_13] : memref<8x128xf32, #tpu.memory_space<vmem>>, vector<8x128xf32>
      %23 = vector.shape_cast %22 : vector<8x128xf32> to vector<1x8x128xf32>
      %cst = arith.constant dense<0x7F800000> : vector<1xf32>
      %24 = vector.multi_reduction <minimumf>, %23, %cst [1, 2] : vector<1x8x128xf32> to vector<1xf32>
      %25 = vector.shape_cast %24 : vector<1xf32> to vector<1x1x1xf32>
      %26 = vector.extract %25[0, 0, 0] : f32 from vector<1x1x1xf32>
      %c0_14 = arith.constant 0 : index
      %c0_15 = arith.constant 0 : index
      %27 = vector.load %arg5[%c0_14, %c0_15] : memref<8x128xf32, #tpu.memory_space<vmem>>, vector<8x128xf32>
      %28 = vector.shape_cast %27 : vector<8x128xf32> to vector<1x8x128xf32>
      %cst_16 = arith.constant dense<0xFF800000> : vector<1xf32>
      %29 = vector.multi_reduction <maximumf>, %28, %cst_16 [1, 2] : vector<1x8x128xf32> to vector<1xf32>
      %30 = vector.shape_cast %29 : vector<1xf32> to vector<1x1x1xf32>
      %31 = vector.extract %30[0, 0, 0] : f32 from vector<1x1x1xf32>
      %c0_17 = arith.constant 0 : index
      %32 = memref.load %arg7[%c0_17] : memref<2xf32, #tpu.memory_space<smem>>
      memref.store %26, %arg7[%c0_17] : memref<2xf32, #tpu.memory_space<smem>>
      %33 = arith.subf %31, %26 : f32
      %cst_18 = arith.constant 1.000000e-10 : f32
      %34 = arith.addf %33, %cst_18 : f32
      %cst_19 = arith.constant 1.000000e+00 : f32
      %35 = arith.divf %cst_19, %34 : f32
      %c1 = arith.constant 1 : index
      %36 = memref.load %arg7[%c1] : memref<2xf32, #tpu.memory_space<smem>>
      memref.store %35, %arg7[%c1] : memref<2xf32, #tpu.memory_space<smem>>
    } else {
    }
    %c1_i32 = arith.constant 1 : i32
    %14 = arith.cmpi eq, %arg0, %c1_i32 : i32
    %15 = arith.extui %14 : i1 to i32
    %c0_i32_8 = arith.constant 0 : i32
    %16 = arith.cmpi ne, %15, %c0_i32_8 : i32
    scf.if %16 {
      %c0_12 = arith.constant 0 : index
      %22 = memref.load %arg7[%c0_12] : memref<2xf32, #tpu.memory_space<smem>>
      %c1 = arith.constant 1 : index
      %23 = memref.load %arg7[%c1] : memref<2xf32, #tpu.memory_space<smem>>
      %24 = vector.broadcast %22 : f32 to vector<16x128xf32>
      %25 = arith.subf %5, %24 : vector<16x128xf32>
      %26 = vector.broadcast %23 : f32 to vector<16x128xf32>
      %27 = arith.mulf %25, %26 : vector<16x128xf32>
      %cst = arith.constant 9.99999997E-7 : f32
      %28 = vector.broadcast %cst : f32 to vector<16x128xf32>
      %29 = arith.maximumf %27, %28 : vector<16x128xf32>
      %30 = math.log %29 : vector<16x128xf32>
      %cst_13 = arith.constant 2.000000e+00 : f32
      %31 = math.log %cst_13 : f32
      %32 = vector.broadcast %31 : f32 to vector<16x128xf32>
      %33 = arith.divf %30, %32 : vector<16x128xf32>
      %34 = arith.mulf %27, %33 : vector<16x128xf32>
      %c0_14 = arith.constant 0 : index
      %c0_15 = arith.constant 0 : index
      %35 = vector.load %arg6[%c0_14, %c0_15] : memref<8x128xf32, #tpu.memory_space<vmem>>, vector<8x128xf32>
      %36 = vector.shape_cast %34 : vector<16x128xf32> to vector<2x8x128xf32>
      %cst_16 = arith.constant dense<0.000000e+00> : vector<8x128xf32>
      %37 = vector.multi_reduction <add>, %36, %cst_16 [0] : vector<2x8x128xf32> to vector<8x128xf32>
      %38 = arith.addf %35, %37 : vector<8x128xf32>
      %c0_17 = arith.constant 0 : index
      %c0_18 = arith.constant 0 : index
      %39 = vector.load %arg6[%c0_17, %c0_18] : memref<8x128xf32, #tpu.memory_space<vmem>>, vector<8x128xf32>
      tpu.vector_store %arg6[%c0_17, %c0_18], %38 {strides = array<i32>} : memref<8x128xf32, #tpu.memory_space<vmem>>, vector<8x128xf32>,
    } else {
    }
    %c1_i32_9 = arith.constant 1 : i32
    %17 = arith.cmpi eq, %arg0, %c1_i32_9 : i32
    %c0_i32_10 = arith.constant 0 : i32
    %18 = arith.cmpi eq, %arg1, %c0_i32_10 : i32
    %19 = arith.andi %17, %18 : i1
    %20 = arith.extui %19 : i1 to i32
    %c0_i32_11 = arith.constant 0 : i32
    %21 = arith.cmpi ne, %20, %c0_i32_11 : i32
    scf.if %21 {
      %c0_12 = arith.constant 0 : index
      %c0_13 = arith.constant 0 : index
      %22 = vector.load %arg6[%c0_12, %c0_13] : memref<8x128xf32, #tpu.memory_space<vmem>>, vector<8x128xf32>
      %23 = vector.shape_cast %22 : vector<8x128xf32> to vector<1x8x128xf32>
      %cst = arith.constant dense<0.000000e+00> : vector<1xf32>
      %24 = vector.multi_reduction <add>, %23, %cst [1, 2] : vector<1x8x128xf32> to vector<1xf32>
      %25 = vector.shape_cast %24 : vector<1xf32> to vector<1x1x1xf32>
      %26 = vector.extract %25[0, 0, 0] : f32 from vector<1x1x1xf32>
      %cst_14 = arith.constant 2.048000e+03 : f32
      %27 = arith.divf %26, %cst_14 : f32
      %28 = vector.broadcast %27 : f32 to vector<1x1xf32>
      %c0_15 = arith.constant 0 : index
      %c0_16 = arith.constant 0 : index
      %29 = vector.load %arg3[%c0_15, %c0_16] : memref<1x1xf32, #tpu.memory_space<vmem>>, vector<1x1xf32>
      tpu.vector_store %arg3[%c0_15, %c0_16], %28 {strides = array<i32>} : memref<1x1xf32, #tpu.memory_space<vmem>>, vector<1x1xf32>,
    } else {
    }
    return
  }
  func.func @transform_0(%arg0: i32, %arg1: i32) -> (i32, i32) {
    %c0_i32 = arith.constant 0 : i32
    %c0_i32_0 = arith.constant 0 : i32
    return %arg1, %c0_i32 : i32, i32
  }
  func.func @transform_1(%arg0: i32, %arg1: i32) -> (i32, i32) {
    %c0_i32 = arith.constant 0 : i32
    %c0_i32_0 = arith.constant 0 : i32
    %c0_i32_1 = arith.constant 0 : i32
    return %c0_i32, %c0_i32_0 : i32, i32
  }
}

</mosaic_0001>

<bundles_post_ra>
// kernel: td_forward.1
= control target key start
LH: loop header
LB: loop body
LE: loop exit
PB: predicated region body
PF: predicated region fallthrough
CT: control target
= control target key end

     0   :  { %6 = vsyncpa [#allocation7], 0  ;;  %s404_s6 = smov 0   ;;  %s406_s7 = smov 0   ;;  %s467_s0 = inlined_call_operand.vmem [shape: f32[16,128], index: 0, kind: input, shape index: {}]   ;;  %s468_s1 = inlined_call_operand.hbm [shape: f32[1,1], index: 1, kind: output, shape index: {}]  }
   0x1   :  { %s408_s8 = smov 0  }
   0x2 LB: > { %s275_s9 = sadd.s32 4294967295, %s388_s8   ;;  %s24_s10 = sadd.s32 1, %s384_s7  ;;  %s388_s8 = sphi %s408_s8, %s12_s8   ;;  %s384_s7 = sphi %s406_s7, %s471_s7   ;;  %s380_s6 = sphi %s404_s6, %s470_s6  }
   0x3   : > { %p26_p0 = scmp.ge.s32.totalorder %s24_s10, 2  ;;  %p278_p1 = scmp.ge.s32.totalorder %s388_s8, 1 }
   0x4   : > { %p96_p2 = scmp.lt.s32.totalorder %s388_s8, 3 }
   0x5   : > { %s473_s10 = smov (%p26_p0, %s24_s10), 0 }
   0x6   : > { %p97_p3 = pnand %p278_p1, %p96_p2 }
   0x7   : > { %p117_p4 = scmp.eq.s32.totalorder (!%p97_p3), %s380_s6, 0 }
   0x8   : > { %100 = sbr.rel (%p97_p3) target bundleno = 577 (0x241), region = 24 }
   0xd   : > { %122 = sbr.rel (!%p117_p4) target bundleno = 18 (0x12), region = 28  ;;  %v390_v0 = vmov (%p117_p4), inf   ;;  %v391_v1 = vmov (%p117_p4), -inf   ;;  %v392_v2 = vmov (%p117_p4), 0.0  }
   0xe   : > { %123 = vst [vmem:[#allocation2] sm:$0xff] (%p117_p4), %v390_v0  ;;  %124 = vst [vmem:[#allocation3] sm:$0xff] (%p117_p4), %v391_v1 }
   0xf   : > { %125 = vst [vmem:[#allocation4] sm:$0xff] (%p117_p4), %v392_v2 }
  0x12 PF: > { %v126_v3 = vld [vmem:[%s467_s0] sm:$0xff]  ;;  %v127_v4 = vld [vmem:[%s467_s0 + $0x8] sm:$0xff]  ;;  %p280_p5 = scmp.ne.s32.totalorder %s380_s6, 0 }
  0x14   : > { %130 = sbr.rel (%p280_p5) target bundleno = 30 (0x1e), region = 32 }
  0x19   : > { %v131_v5 = vld [vmem:[#allocation2] sm:$0xff]  ;;  %v132_v6 = vmin.f32 %v126_v3, %v127_v4  ;;  %v135_v7 = vld [vmem:[#allocation3] sm:$0xff]  ;;  %v136_v8 = vmax.f32 %v126_v3, %v127_v4 }
  0x1b   : > { %v133_v9 = vmin.f32 %v131_v5, %v132_v6  ;;  %v137_v10 = vmax.f32 %v135_v7, %v136_v8 }
  0x1d   : > { %134 = vst [vmem:[#allocation2] sm:$0xff] %v133_v9  ;;  %138 = vst [vmem:[#allocation3] sm:$0xff] %v137_v10 }
  0x1e PF: > { %140 = sbr.rel (!%p117_p4) target bundleno = 311 (0x137), region = 36 }
  0x24   : > { %v141_v11 = vld [vmem:[#allocation2] sm:$0xff]  ;;  %v151_v12 = vld [vmem:[#allocation3] sm:$0xff] }
  0x25   : > { %142 = vmin.xlane.f32.xlu0 %v141_v11 }
  0x29   : > { %152 = vmax.xlane.f32.xlu0 %v151_v12 }
  0xae   : > { %v143_v13 = vpop.xlane.xlu0 %142 }
  0xaf   : > { %v144_v14 = vrot.slane %v143_v13, 4 }
  0xb1   : > { %v145_v15 = vmin.f32 %v143_v13, %v144_v14 }
  0xb2   : > { %v153_v16 = vpop.xlane.xlu0 %152 }
  0xb3   : > { %v146_v17 = vrot.slane %v145_v15, 2  ;;  %v154_v18 = vrot.slane %v153_v16, 4 }
  0xb5   : > { %v155_v19 = vmax.f32 %v153_v16, %v154_v18  ;;  %v147_v20 = vmin.f32 %v145_v15, %v146_v17 }
  0xb7   : > { %v156_v21 = vrot.slane %v155_v19, 2  ;;  %v148_v22 = vrot.slane %v147_v20, 1 }
  0xb9   : > { %v157_v23 = vmax.f32 %v155_v19, %v156_v21  ;;  %v149_v24 = vmin.f32 %v147_v20, %v148_v22 }
  0xbb   : > { %290 = vpush %v149_v24  ;;  %v158_v25 = vrot.slane %v157_v23, 1 }
  0xbd   : > { %v159_v26 = vmax.f32 %v157_v23, %v158_v25 }
  0xbf   : > { %292 = vpush %v159_v26 }
  0xec   : > { %s291_s15 = spop %290 }
  0xed   : > { %162 = sst [smem:[#allocation5]] %s291_s15 }
  0xf0   : > { %s293_s16 = spop %292 }
  0xf1   : > { %s163_s17 = ssub.f32 %s293_s16, %s291_s15 }
  0xf3   : > { %s164_s18 = sadd.f32 1e-10, %s163_s17 }
  0xf5   : > { %v165_v27 = vstv %s164_s18 }
  0xf6   : > { %332 = vrcp.f32 %v165_v27 }
 0x103   : > { %v333_v28 = vpop.eup %332 }
 0x104   : > { %294 = vpush %v333_v28 }
 0x135   : > { %s295_s19 = spop %294 }
 0x136   : > { %169 = sst [smem:[#allocation5 + $0x1]] %s295_s19 }
 0x137 PF: > { %p170_p6 = scmp.eq.s32.totalorder %s380_s6, 1  ;;  %p281_p7 = scmp.ne.s32.totalorder %s380_s6, 1 }
 0x138   : > { %s174_s20 = sld [smem:[#allocation5]] (!%p281_p7) }
 0x139   : > { %173 = sbr.rel (%p281_p7) target bundleno = 351 (0x15f), region = 40  ;;  %s282_s21 = sld [smem:[#allocation5 + $0x1]] (!%p281_p7) }
 0x13e   : > { %v176_v29 = vstv %s174_s20  ;;  %v193_v45 = vld [vmem:[#allocation4] sm:$0xff] }
 0x13f   : > { %v177_v30 = vsub.f32 %v126_v3, %v176_v29  ;;  %v178_v31 = vsub.f32 %v127_v4, %v176_v29  ;;  %v179_v32 = vstv %s282_s21 }
 0x141   : > { %v180_v33 = vmul.f32 %v179_v32, %v177_v30  ;;  %v181_v34 = vmul.f32 %v179_v32, %v178_v31 }
 0x143   : > { %v182_v35 = vmax.f32 %v180_v33, 1e-06  ;;  %v183_v36 = vmax.f32 %v181_v34, 1e-06 }
 0x145   : > { %334 = vlog2.f32 %v182_v35 }
 0x146   : > { %336 = vlog2.f32 %v183_v36 }
 0x152   : > { %v335_v37 = vpop.eup %334 }
 0x153   : > { %v337_v38 = vpop.eup %336  ;;  %v185_v39 = vmul.f32 0.6931472, %v335_v37 }
 0x154   : > { %v187_v40 = vmul.f32 0.6931472, %v337_v38 }
 0x155   : > { %v189_v41 = vmul.f32 1.442695, %v185_v39 }
 0x156   : > { %v190_v42 = vmul.f32 1.442695, %v187_v40 }
 0x157   : > { %v191_v43 = vmul.f32 %v189_v41, %v180_v33 }
 0x158   : > { %v192_v44 = vmul.f32 %v190_v42, %v181_v34 }
 0x15a   : > { %v194_v46 = vadd.f32 %v192_v44, %v191_v43 }
 0x15c   : > { %v195_v47 = vadd.f32 %v194_v46, %v193_v45 }
 0x15e   : > { %196 = vst [vmem:[#allocation4] sm:$0xff] %v195_v47 }
 0x15f PF: > { %200 = sbr.rel (!%p170_p6) target bundleno = 562 (0x232), region = 44  ;;  %vm215_vm0 = vcmask (%p170_p6), 0  }
 0x165   : > { %v201_v48 = vld [vmem:[#allocation4] sm:$0xff] }
 0x166   : > { %202 = vadd.xlane.f32.xlu0 %v201_v48 }
 0x1ef   : > { %v203_v49 = vpop.xlane.xlu0 %202 }
 0x1f0   : > { %v204_v50 = vrot.slane %v203_v49, 4 }
 0x1f2   : > { %v205_v51 = vadd.f32 %v204_v50, %v203_v49 }
 0x1f4   : > { %v206_v52 = vrot.slane %v205_v51, 2 }
 0x1f6   : > { %v207_v53 = vadd.f32 %v206_v52, %v205_v51 }
 0x1f8   : > { %v208_v54 = vrot.slane %v207_v53, 1 }
 0x1fa   : > { %v209_v55 = vadd.f32 %v208_v54, %v207_v53 }
 0x1fc   : > { %296 = vpush %v209_v55 }
 0x22d   : > { %s297_s22 = spop %296 }
 0x22e   : > { %s213_s23 = smul.f32 0.00048828125, %s297_s22 }
 0x230   : > { %v214_v56 = vstv %s213_s23 }
 0x231   : > { %216 = vst.msk [vmem:[#allocation6] sm:$0x1] %vm215_vm0, %v214_v56 }
 0x232 PF: > { %p443_p8 = scmp.eq.s32.totalorder %s275_s9, 1  ;;  %s393_s25 = smov [#allocation6]  }
 0x233   : > { %s224_s26 = sshll.u32 %s393_s25, 4  ;;  %s225_s26 = int_to_ptr.vmem [resolvable:$true] %s224_s26 }
 0x234   : > { %s338_s27 = scalar_lea.vmem %s225_s26, 16  ;;  %s344_s28 = scalar_lea.vmem %s225_s26, 32 }
 0x235   : > { %p339_p9 = scmp.ne.s32.totalorder %s225_s26, %s338_s27  ;;  %p345_p12 = scmp.lt.s32.totalorder %s225_s26, %s225_s26 }
 0x236   : > { %p346_p13 = scmp.lt.s32.totalorder %s344_s28, %s338_s27 }
 0x237   : > { %p340_p10 = pnand %p339_p9, %p443_p8 }
 0x238   : > { %p347_p0 = por %p346_p13, %p345_p12 }
 0x239   : > { %p341_p11 = pneg %p340_p10 }
 0x23b   : > { %p348_p1 = pnand %p347_p0, %p341_p11 }
 0x23d   : > { %351 = shalt.err (!%p348_p1)
}
 0x23e   : > { %299 = dma.vmem_to_hbm [thread:$0]  (%p443_p8), %s225_s26, 16, %s468_s1, [#allocation7]  }
 0x23f   : > { %375 = dma.done.wait (%p443_p8), [#allocation7], 16  }
 0x240   : > { %377 = vsyncadd (%p443_p8), [#allocation7], 4294967280 }
 0x241 PF: > { %s12_s8 = sadd.s32 1, %s388_s8   ;;  %s470_s6 = smov %s384_s7 }
 0x242   : > { %p9_p2 = scmp.ge.s32.totalorder %s12_s8, 4   ;;  %s471_s7 = smov %s473_s10 }
 0x244   :  { %11 = sbr.rel (!%p9_p2) target bundleno = 2 (0x2), region = 73 }
 0x249   :  { %237 = vsyncpa [#allocation7], 1 }
 0x24a   :  { %239 = vsyncpa [#allocation7 + $0x1], 1 }

</bundles_post_ra>
